<compile_context>
chip_gen: v6e
topology: v6e:2x2x1
jax: 0.10.0
libtpu: 0.0.40
codegen_flags: <defaults>
</compile_context>

<pallas_src>
import functools

import jax
import jax.numpy as jnp
from jax.experimental import pallas as pl
from jax.experimental.pallas import tpu as pltpu


def _round_up(x, m):
    return (x + m - 1) // m * m


def _pad2(a, rows, cols):
    return jnp.pad(a, ((0, rows - a.shape[0]), (0, cols - a.shape[1])))


def _fused_sage_kernel(a_ref, scale_ref, x_ref, ws1_ref, wn1_ref, b1_ref,
                       ws2_ref, wn2_ref, b2_ref, o_ref, h1_ref,
                       *, tm, a_resident):
    """grid = (2 phases, n_row_tiles).  Scratch h1_ref persists across grid steps."""
    phase = pl.program_id(0)
    i = pl.program_id(1)
    row0 = pl.multiple_of(i * tm, tm)

    def a_tile():
        # Resident A: slice the (tm, N) row tile out of the full VMEM block.
        # Streamed A: the BlockSpec already delivers the (tm, N) row tile.
        return a_ref[pl.ds(row0, tm), :] if a_resident else a_ref[...]

    def sage(h_self, h_full_ref, ws_ref, wn_ref, b_ref):
        # mean aggregation: exact 0/1 bf16 A row-tile @ H (f32 accumulate on the MXU),
        # then the f32 per-row 1/deg scale (numerically cleaner than bf16 1/deg in A).
        agg = jnp.dot(a_tile(), h_full_ref[...], preferred_element_type=jnp.float32)
        neigh = (agg * scale_ref[...]).astype(jnp.bfloat16)
        # Two accumulating MXU dots (no lane-axis concat temporary); f32 epilogue.
        z = jnp.dot(h_self, ws_ref[...], preferred_element_type=jnp.float32)
        z = z + jnp.dot(neigh, wn_ref[...], preferred_element_type=jnp.float32)
        return z + b_ref[...]

    @pl.when(phase == 0)
    def _layer1():
        h_self = x_ref[pl.ds(row0, tm), :]                               # bf16 (tm, Fin_p)
        z = sage(h_self, x_ref, ws1_ref, wn1_ref, b1_ref)                # f32  (tm, H1_p)
        h1_ref[pl.ds(row0, tm), :] = jnp.maximum(z, 0.0).astype(h1_ref.dtype)

    @pl.when(phase == 1)
    def _layer2():
        h_self = h1_ref[pl.ds(row0, tm), :]                              # bf16 (tm, H1_p)
        o_ref[...] = sage(h_self, h1_ref, ws2_ref, wn2_ref, b2_ref).astype(o_ref.dtype)


def _footprint_bytes(n_pad, tm, fin_p, h1_p, h2_p, a_resident):
    bf = 2
    resident = (n_pad * fin_p * bf                          # X (Buffered(1))
                + 2 * (fin_p * h1_p + h1_p * h2_p) * bf     # self/neigh weights, 2 layers
                + (h1_p + h2_p) * 4)                        # biases (f32)
    scratch = n_pad * h1_p * bf                             # resident h1 scratch
    out_buf = 2 * tm * h2_p * 4                             # double-buffered f32 out tile
    scale_buf = 2 * tm * 128 * 4                            # (tm,1) f32 tile, lane-padded
    a_bytes = n_pad * n_pad * bf if a_resident else 2 * tm * n_pad * bf
    return resident + scratch + out_buf + scale_buf + a_bytes


def _pick_tiling(n, fin_p, h1_p, h2_p, row_tile, budget):
    """Largest 16-multiple row tile that fits the VMEM budget; prefer resident A."""
    cap = max(16, _round_up(min(row_tile, n), 16))
    candidates = [t for t in (512, 384, 256, 128, 64, 32, 16) if t <= cap] or [16]
    for tm in candidates:
        n_pad = _round_up(n, tm)
        if _footprint_bytes(n_pad, tm, fin_p, h1_p, h2_p, True) <= budget:
            return tm, n_pad, True
        if _footprint_bytes(n_pad, tm, fin_p, h1_p, h2_p, False) <= budget:
            return tm, n_pad, False
    tm = candidates[-1]
    return tm, _round_up(n, tm), False


def graphsage_forward(adj, x, params, *, row_tile=256, vmem_budget_bytes=None):
    """out = SAGEConv2(A, relu(SAGEConv1(A, x))), aggregator='mean', fused kernel.

    adj[i, j] = 1.0 if j is an (in-)neighbor of i, else 0.0 (dense 0/1 adjacency).
    """
    n, fin = x.shape
    h1 = params["w_self1"].shape[0]
    h2 = params["w_self2"].shape[0]

    fin_p = _round_up(fin, 128)                 # lane-dense feature dims
    h1_p = _round_up(h1, 128)
    h2_p = _round_up(h2, 128)

    if vmem_budget_bytes is None:
        try:    # leave headroom under the physical per-core VMEM (64 MiB on v7x)
            vmem_budget_bytes = int(pltpu.get_tpu_info().vmem_capacity_bytes * 3 // 4)
        except Exception:
            vmem_budget_bytes = 48 * 1024 * 1024
    tm, n_pad, a_resident = _pick_tiling(n, fin_p, h1_p, h2_p, row_tile, vmem_budget_bytes)
    n_tiles = n_pad // tm
    footprint = _footprint_bytes(n_pad, tm, fin_p, h1_p, h2_p, a_resident)
    vmem_limit = int(max(footprint + (footprint >> 2) + (4 << 20), 32 << 20))

    # Exact 0/1 adjacency in bf16; f32 per-row 1/deg scale ('mean', 0 if no neighbors).
    a_p = _pad2(adj, n_pad, n_pad).astype(jnp.bfloat16)
    deg = jnp.sum(adj, axis=1, keepdims=True)
    scale_p = jnp.pad(jnp.where(deg > 0, 1.0 / jnp.maximum(deg, 1.0), 0.0)
                      .astype(jnp.float32), ((0, n_pad - n), (0, 0)))

    x_p = _pad2(x, n_pad, fin_p).astype(jnp.bfloat16)

    # Pre-transpose once in the wrapper ([F_in, F_out], MXU-ready, bf16); biases f32.
    ws1 = _pad2(params["w_self1"].T, fin_p, h1_p).astype(jnp.bfloat16)
    wn1 = _pad2(params["w_neigh1"].T, fin_p, h1_p).astype(jnp.bfloat16)
    ws2 = _pad2(params["w_self2"].T, h1_p, h2_p).astype(jnp.bfloat16)
    wn2 = _pad2(params["w_neigh2"].T, h1_p, h2_p).astype(jnp.bfloat16)
    b1 = _pad2(params["b1"], 1, h1_p).astype(jnp.float32)
    b2 = _pad2(params["b2"], 1, h2_p).astype(jnp.float32)

    kernel = functools.partial(_fused_sage_kernel, tm=tm, a_resident=a_resident)

    one = pl.Buffered(1)    # single-buffer operands that are never re-fetched
    if a_resident:
        a_spec = pl.BlockSpec((n_pad, n_pad), lambda p, i: (0, 0), pipeline_mode=one)
    else:
        a_spec = pl.BlockSpec((tm, n_pad), lambda p, i: (i, 0))  # streamed, double-buffered

    flops = (2 * n_pad * n_pad * (fin_p + h1_p)                  # A matmuls, both layers
             + 4 * n_pad * (fin_p * h1_p + h1_p * h2_p))         # weight matmuls
    a_hbm = n_pad * n_pad * 2 * (1 if a_resident else 2)
    bytes_accessed = (a_hbm + n_pad * (fin_p * 2 + h2_p * 4 + 8)
                      + 2 * (fin_p * h1_p + h1_p * h2_p) * 2 + (h1_p + h2_p) * 4)

    out = pl.pallas_call(
        kernel,
        out_shape=jax.ShapeDtypeStruct((n_pad, h2_p), jnp.float32),
        grid=(2, n_tiles),                                       # (phase, row tile)
        in_specs=[
            a_spec,                                                          # A (0/1 bf16)
            pl.BlockSpec((tm, 1), lambda p, i: (i, 0)),                      # 1/deg (f32)
            pl.BlockSpec((n_pad, fin_p), lambda p, i: (0, 0), pipeline_mode=one),  # X
            pl.BlockSpec((fin_p, h1_p), lambda p, i: (0, 0), pipeline_mode=one),   # W_self1^T
            pl.BlockSpec((fin_p, h1_p), lambda p, i: (0, 0), pipeline_mode=one),   # W_neigh1^T
            pl.BlockSpec((1, h1_p), lambda p, i: (0, 0), pipeline_mode=one),       # b1
            pl.BlockSpec((h1_p, h2_p), lambda p, i: (0, 0), pipeline_mode=one),    # W_self2^T
            pl.BlockSpec((h1_p, h2_p), lambda p, i: (0, 0), pipeline_mode=one),    # W_neigh2^T
            pl.BlockSpec((1, h2_p), lambda p, i: (0, 0), pipeline_mode=one),       # b2
        ],
        # Phase 0 pins the output block index at 0 and never writes it; phase 1 step 0
        # also maps to block 0, so under flush-on-change writeback no uninitialized block
        # ever reaches HBM, and every block is fully overwritten exactly once in phase 1.
        out_specs=pl.BlockSpec((tm, h2_p), lambda p, i: (p * i, 0)),
        scratch_shapes=[pltpu.VMEM((n_pad, h1_p), jnp.bfloat16)],   # resident h1
        cost_estimate=pl.CostEstimate(flops=flops, transcendentals=0,
                                      bytes_accessed=bytes_accessed),
        compiler_params=pltpu.CompilerParams(
            # Phase 1 reads h1 tiles produced by all phase-0 steps through per-core VMEM
            # scratch, so neither grid axis may be sharded across TensorCores.
            dimension_semantics=("arbitrary", "arbitrary"),
            vmem_limit_bytes=vmem_limit,
        ),
    )(a_p, scale_p, x_p, ws1, wn1, b1, ws2, wn2, b2)

    return out[:n, :h2]


def make_params(key, in_feats, h_feats1, h_feats2):
    """Deterministic synthetic parameter init (nn.Linear-style shapes)."""
    ks = jax.random.split(key, 6)
    s1 = 1.0 / jnp.sqrt(in_feats)
    s2 = 1.0 / jnp.sqrt(h_feats1)
    return {
        "w_self1": jax.random.uniform(ks[0], (h_feats1, in_feats), jnp.float32, -s1, s1),
        "w_neigh1": jax.random.uniform(ks[1], (h_feats1, in_feats), jnp.float32, -s1, s1),
        "b1": jax.random.uniform(ks[2], (1, h_feats1), jnp.float32, -s1, s1),
        "w_self2": jax.random.uniform(ks[3], (h_feats2, h_feats1), jnp.float32, -s2, s2),
        "w_neigh2": jax.random.uniform(ks[4], (h_feats2, h_feats1), jnp.float32, -s2, s2),
        "b2": jax.random.uniform(ks[5], (1, h_feats2), jnp.float32, -s2, s2),
    }


if __name__ == "__main__":
    key = jax.random.PRNGKey(0)
    k_adj, k_feat, k_par = jax.random.split(key, 3)

    # Small synthetic graph: dense 0/1 adjacency, edge j->i means j is a neighbor of i.
    N = 64
    in_feats = 8
    h_feats1 = 32
    h_feats2 = 16

    adj = (jax.random.uniform(k_adj, (N, N)) < 0.25).astype(jnp.float32)
    adj = adj * (1.0 - jnp.eye(N, dtype=jnp.float32))

    x = jax.random.normal(k_feat, (N, in_feats), jnp.float32)
    params = make_params(k_par, in_feats, h_feats1, h_feats2)

    # row_tile=32 -> two row tiles at N=64, exercising the tiled 2-phase grid path
    # (with the adjacency fully VMEM-resident at this size).
    out = jax.block_until_ready(graphsage_forward(adj, x, params, row_tile=32))

    # Pure f32 reference (DGL SAGEConv 'mean' semantics) -> bf16 MXU path tolerance.
    deg = jnp.sum(adj, axis=1, keepdims=True)
    a_norm = adj * jnp.where(deg > 0, 1.0 / jnp.maximum(deg, 1.0), 0.0)

    def ref_layer(h, ws, wn, b):
        return h @ ws.T + (a_norm @ h) @ wn.T + b

    ref = jnp.maximum(ref_layer(x, params["w_self1"], params["w_neigh1"], params["b1"]), 0.0)
    ref = ref_layer(ref, params["w_self2"], params["w_neigh2"], params["b2"])

    assert out.shape == (N, h_feats2)
    assert bool(jnp.all(jnp.isfinite(out)))
    assert jnp.allclose(out, ref, atol=1e-1, rtol=1e-1), float(jnp.max(jnp.abs(out - ref)))
    print("KERNEL_OK")
</pallas_src>

<mosaic_0001>
module attributes {stable_mosaic.version = 11 : i64} {
  func.func @_fused_sage_kernel(%arg0: i32, %arg1: i32, %arg2: memref<64x64xbf16, #tpu.memory_space<vmem>>, %arg3: memref<32x1xf32, #tpu.memory_space<vmem>>, %arg4: memref<64x128xbf16, #tpu.memory_space<vmem>>, %arg5: memref<128x128xbf16, #tpu.memory_space<vmem>>, %arg6: memref<128x128xbf16, #tpu.memory_space<vmem>>, %arg7: memref<1x128xf32, #tpu.memory_space<vmem>>, %arg8: memref<128x128xbf16, #tpu.memory_space<vmem>>, %arg9: memref<128x128xbf16, #tpu.memory_space<vmem>>, %arg10: memref<1x128xf32, #tpu.memory_space<vmem>>, %arg11: memref<32x128xf32, #tpu.memory_space<vmem>>, %arg12: memref<64x128xbf16, #tpu.memory_space<vmem>>) attributes {dimension_semantics = [#tpu.dimension_semantics<arbitrary>, #tpu.dimension_semantics<arbitrary>], iteration_bounds = array<i64: 2, 2>, scalar_prefetch = 0 : i64, scratch_operands = 1 : i64, tpu.core_type = #tpu.core_type<tc>, window_params = [{pipeline_mode = #tpu.pipeline_mode<synchronous>, transform_indices = @transform_0, window_bounds = array<i64: 64, 64>}, {transform_indices = @transform_1, window_bounds = array<i64: 32, 1>}, {pipeline_mode = #tpu.pipeline_mode<synchronous>, transform_indices = @transform_2, window_bounds = array<i64: 64, 128>}, {pipeline_mode = #tpu.pipeline_mode<synchronous>, transform_indices = @transform_3, window_bounds = array<i64: 128, 128>}, {pipeline_mode = #tpu.pipeline_mode<synchronous>, transform_indices = @transform_4, window_bounds = array<i64: 128, 128>}, {pipeline_mode = #tpu.pipeline_mode<synchronous>, transform_indices = @transform_5, window_bounds = array<i64: 1, 128>}, {pipeline_mode = #tpu.pipeline_mode<synchronous>, transform_indices = @transform_6, window_bounds = array<i64: 128, 128>}, {pipeline_mode = #tpu.pipeline_mode<synchronous>, transform_indices = @transform_7, window_bounds = array<i64: 128, 128>}, {pipeline_mode = #tpu.pipeline_mode<synchronous>, transform_indices = @transform_8, window_bounds = array<i64: 1, 128>}, {transform_indices = @transform_9, window_bounds = array<i64: 32, 128>}]} {
    %c32_i32 = arith.constant 32 : i32
    %0 = arith.muli %arg1, %c32_i32 : i32
    %1 = tpu.assume_multiple %0, 32 : i32
    %c0_i32 = arith.constant 0 : i32
    %2 = arith.cmpi eq, %arg0, %c0_i32 : i32
    %3 = arith.extui %2 : i1 to i32
    %c0_i32_0 = arith.constant 0 : i32
    %4 = arith.cmpi ne, %3, %c0_i32_0 : i32
    scf.if %4 {
      %8 = arith.index_cast %1 : i32 to index
      %c0 = arith.constant 0 : index
      %9 = vector.load %arg4[%8, %c0] : memref<64x128xbf16, #tpu.memory_space<vmem>>, vector<32x128xbf16>
      %10 = arith.index_cast %1 : i32 to index
      %c0_2 = arith.constant 0 : index
      %11 = vector.load %arg2[%10, %c0_2] : memref<64x64xbf16, #tpu.memory_space<vmem>>, vector<32x64xbf16>
      %c0_3 = arith.constant 0 : index
      %c0_4 = arith.constant 0 : index
      %12 = vector.load %arg4[%c0_3, %c0_4] : memref<64x128xbf16, #tpu.memory_space<vmem>>, vector<64x128xbf16>
      %cst = arith.constant dense<0.000000e+00> : vector<32x128xf32>
      %13 = tpu.matmul %11, %12, %cst {dimension_numbers = #tpu.dot_dimension_numbers<[1], [0], [0], [1], [0, 0, 1, 1], [], []>} : vector<32x64xbf16>, vector<64x128xbf16>, vector<32x128xf32> -> vector<32x128xf32>
      %c0_5 = arith.constant 0 : index
      %c0_6 = arith.constant 0 : index
      %14 = vector.load %arg3[%c0_5, %c0_6] : memref<32x1xf32, #tpu.memory_space<vmem>>, vector<32x1xf32>
      %15 = vector.broadcast %14 : vector<32x1xf32> to vector<32x128xf32>
      %16 = arith.mulf %13, %15 : vector<32x128xf32>
      %17 = arith.truncf %16 : vector<32x128xf32> to vector<32x128xbf16>
      %c0_7 = arith.constant 0 : index
      %c0_8 = arith.constant 0 : index
      %18 = vector.load %arg5[%c0_7, %c0_8] : memref<128x128xbf16, #tpu.memory_space<vmem>>, vector<128x128xbf16>
      %cst_9 = arith.constant dense<0.000000e+00> : vector<32x128xf32>
      %19 = tpu.matmul %9, %18, %cst_9 {dimension_numbers = #tpu.dot_dimension_numbers<[1], [0], [0], [1], [0, 0, 1, 1], [], []>} : vector<32x128xbf16>, vector<128x128xbf16>, vector<32x128xf32> -> vector<32x128xf32>
      %c0_10 = arith.constant 0 : index
      %c0_11 = arith.constant 0 : index
      %20 = vector.load %arg6[%c0_10, %c0_11] : memref<128x128xbf16, #tpu.memory_space<vmem>>, vector<128x128xbf16>
      %cst_12 = arith.constant dense<0.000000e+00> : vector<32x128xf32>
      %21 = tpu.matmul %17, %20, %cst_12 {dimension_numbers = #tpu.dot_dimension_numbers<[1], [0], [0], [1], [0, 0, 1, 1], [], []>} : vector<32x128xbf16>, vector<128x128xbf16>, vector<32x128xf32> -> vector<32x128xf32>
      %22 = arith.addf %19, %21 : vector<32x128xf32>
      %c0_13 = arith.constant 0 : index
      %c0_14 = arith.constant 0 : index
      %23 = vector.load %arg7[%c0_13, %c0_14] : memref<1x128xf32, #tpu.memory_space<vmem>>, vector<1x128xf32>
      %24 = vector.broadcast %23 : vector<1x128xf32> to vector<32x128xf32>
      %25 = arith.addf %22, %24 : vector<32x128xf32>
      %cst_15 = arith.constant 0.000000e+00 : f32
      %26 = vector.broadcast %cst_15 : f32 to vector<32x128xf32>
      %27 = arith.maximumf %25, %26 : vector<32x128xf32>
      %28 = arith.truncf %27 : vector<32x128xf32> to vector<32x128xbf16>
      %29 = arith.index_cast %1 : i32 to index
      %c0_16 = arith.constant 0 : index
      %30 = vector.load %arg12[%29, %c0_16] : memref<64x128xbf16, #tpu.memory_space<vmem>>, vector<32x128xbf16>
      tpu.vector_store %arg12[%29, %c0_16], %28 {strides = array<i32>} : memref<64x128xbf16, #tpu.memory_space<vmem>>, vector<32x128xbf16>,
    } else {
    }
    %c1_i32 = arith.constant 1 : i32
    %5 = arith.cmpi eq, %arg0, %c1_i32 : i32
    %6 = arith.extui %5 : i1 to i32
    %c0_i32_1 = arith.constant 0 : i32
    %7 = arith.cmpi ne, %6, %c0_i32_1 : i32
    scf.if %7 {
      %8 = arith.index_cast %1 : i32 to index
      %c0 = arith.constant 0 : index
      %9 = vector.load %arg12[%8, %c0] : memref<64x128xbf16, #tpu.memory_space<vmem>>, vector<32x128xbf16>
      %10 = arith.index_cast %1 : i32 to index
      %c0_2 = arith.constant 0 : index
      %11 = vector.load %arg2[%10, %c0_2] : memref<64x64xbf16, #tpu.memory_space<vmem>>, vector<32x64xbf16>
      %c0_3 = arith.constant 0 : index
      %c0_4 = arith.constant 0 : index
      %12 = vector.load %arg12[%c0_3, %c0_4] : memref<64x128xbf16, #tpu.memory_space<vmem>>, vector<64x128xbf16>
      %cst = arith.constant dense<0.000000e+00> : vector<32x128xf32>
      %13 = tpu.matmul %11, %12, %cst {dimension_numbers = #tpu.dot_dimension_numbers<[1], [0], [0], [1], [0, 0, 1, 1], [], []>} : vector<32x64xbf16>, vector<64x128xbf16>, vector<32x128xf32> -> vector<32x128xf32>
      %c0_5 = arith.constant 0 : index
      %c0_6 = arith.constant 0 : index
      %14 = vector.load %arg3[%c0_5, %c0_6] : memref<32x1xf32, #tpu.memory_space<vmem>>, vector<32x1xf32>
      %15 = vector.broadcast %14 : vector<32x1xf32> to vector<32x128xf32>
      %16 = arith.mulf %13, %15 : vector<32x128xf32>
      %17 = arith.truncf %16 : vector<32x128xf32> to vector<32x128xbf16>
      %c0_7 = arith.constant 0 : index
      %c0_8 = arith.constant 0 : index
      %18 = vector.load %arg8[%c0_7, %c0_8] : memref<128x128xbf16, #tpu.memory_space<vmem>>, vector<128x128xbf16>
      %cst_9 = arith.constant dense<0.000000e+00> : vector<32x128xf32>
      %19 = tpu.matmul %9, %18, %cst_9 {dimension_numbers = #tpu.dot_dimension_numbers<[1], [0], [0], [1], [0, 0, 1, 1], [], []>} : vector<32x128xbf16>, vector<128x128xbf16>, vector<32x128xf32> -> vector<32x128xf32>
      %c0_10 = arith.constant 0 : index
      %c0_11 = arith.constant 0 : index
      %20 = vector.load %arg9[%c0_10, %c0_11] : memref<128x128xbf16, #tpu.memory_space<vmem>>, vector<128x128xbf16>
      %cst_12 = arith.constant dense<0.000000e+00> : vector<32x128xf32>
      %21 = tpu.matmul %17, %20, %cst_12 {dimension_numbers = #tpu.dot_dimension_numbers<[1], [0], [0], [1], [0, 0, 1, 1], [], []>} : vector<32x128xbf16>, vector<128x128xbf16>, vector<32x128xf32> -> vector<32x128xf32>
      %22 = arith.addf %19, %21 : vector<32x128xf32>
      %c0_13 = arith.constant 0 : index
      %c0_14 = arith.constant 0 : index
      %23 = vector.load %arg10[%c0_13, %c0_14] : memref<1x128xf32, #tpu.memory_space<vmem>>, vector<1x128xf32>
      %24 = vector.broadcast %23 : vector<1x128xf32> to vector<32x128xf32>
      %25 = arith.addf %22, %24 : vector<32x128xf32>
      %c0_15 = arith.constant 0 : index
      %c0_16 = arith.constant 0 : index
      %26 = vector.load %arg11[%c0_15, %c0_16] : memref<32x128xf32, #tpu.memory_space<vmem>>, vector<32x128xf32>
      tpu.vector_store %arg11[%c0_15, %c0_16], %25 {strides = array<i32>} : memref<32x128xf32, #tpu.memory_space<vmem>>, vector<32x128xf32>,
    } else {
    }
    return
  }
  func.func @transform_0(%arg0: i32, %arg1: i32) -> (i32, i32) {
    %c0_i32 = arith.constant 0 : i32
    %c0_i32_0 = arith.constant 0 : i32
    %c0_i32_1 = arith.constant 0 : i32
    return %c0_i32, %c0_i32_0 : i32, i32
  }
  func.func @transform_1(%arg0: i32, %arg1: i32) -> (i32, i32) {
    %c0_i32 = arith.constant 0 : i32
    %c0_i32_0 = arith.constant 0 : i32
    return %arg1, %c0_i32 : i32, i32
  }
  func.func @transform_2(%arg0: i32, %arg1: i32) -> (i32, i32) {
    %c0_i32 = arith.constant 0 : i32
    %c0_i32_0 = arith.constant 0 : i32
    %c0_i32_1 = arith.constant 0 : i32
    return %c0_i32, %c0_i32_0 : i32, i32
  }
  func.func @transform_3(%arg0: i32, %arg1: i32) -> (i32, i32) {
    %c0_i32 = arith.constant 0 : i32
    %c0_i32_0 = arith.constant 0 : i32
    %c0_i32_1 = arith.constant 0 : i32
    return %c0_i32, %c0_i32_0 : i32, i32
  }
  func.func @transform_4(%arg0: i32, %arg1: i32) -> (i32, i32) {
    %c0_i32 = arith.constant 0 : i32
    %c0_i32_0 = arith.constant 0 : i32
    %c0_i32_1 = arith.constant 0 : i32
    return %c0_i32, %c0_i32_0 : i32, i32
  }
  func.func @transform_5(%arg0: i32, %arg1: i32) -> (i32, i32) {
    %c0_i32 = arith.constant 0 : i32
    %c0_i32_0 = arith.constant 0 : i32
    %c0_i32_1 = arith.constant 0 : i32
    return %c0_i32, %c0_i32_0 : i32, i32
  }
  func.func @transform_6(%arg0: i32, %arg1: i32) -> (i32, i32) {
    %c0_i32 = arith.constant 0 : i32
    %c0_i32_0 = arith.constant 0 : i32
    %c0_i32_1 = arith.constant 0 : i32
    return %c0_i32, %c0_i32_0 : i32, i32
  }
  func.func @transform_7(%arg0: i32, %arg1: i32) -> (i32, i32) {
    %c0_i32 = arith.constant 0 : i32
    %c0_i32_0 = arith.constant 0 : i32
    %c0_i32_1 = arith.constant 0 : i32
    return %c0_i32, %c0_i32_0 : i32, i32
  }
  func.func @transform_8(%arg0: i32, %arg1: i32) -> (i32, i32) {
    %c0_i32 = arith.constant 0 : i32
    %c0_i32_0 = arith.constant 0 : i32
    %c0_i32_1 = arith.constant 0 : i32
    return %c0_i32, %c0_i32_0 : i32, i32
  }
  func.func @transform_9(%arg0: i32, %arg1: i32) -> (i32, i32) {
    %0 = arith.muli %arg0, %arg1 : i32
    %c0_i32 = arith.constant 0 : i32
    %c0_i32_0 = arith.constant 0 : i32
    return %0, %c0_i32 : i32, i32
  }
}

</mosaic_0001>

<bundles_post_ra>
// kernel: tpu_custom_call.1
= control target key start
LH: loop header
LB: loop body
LE: loop exit
PB: predicated region body
PF: predicated region fallthrough
CT: control target
= control target key end

     0   :  { %s2431_s0 = inlined_call_operand.hbm [shape: bf16[64,64], index: 0, kind: input, shape index: {}]   ;;  %s2432_s1 = inlined_call_operand.vmem [shape: f32[64,1], index: 1, kind: input, shape index: {}]   ;;  %s2433_s2 = inlined_call_operand.hbm [shape: bf16[64,128], index: 2, kind: input, shape index: {}]   ;;  %s2434_s3 = inlined_call_operand.vmem [shape: bf16[128,128], index: 3, kind: input, shape index: {}]   ;;  %s2435_s4 = inlined_call_operand.hbm [shape: bf16[128,128], index: 4, kind: input, shape index: {}]   ;;  %s2436_s5 = inlined_call_operand.vmem [shape: f32[1,128], index: 5, kind: input, shape index: {}]   ;;  %s2437_s6 = inlined_call_operand.hbm [shape: bf16[128,128], index: 6, kind: input, shape index: {}]   ;;  %s2438_s7 = inlined_call_operand.hbm [shape: bf16[128,128], index: 7, kind: input, shape index: {}]   ;;  %s2439_s8 = inlined_call_operand.vmem [shape: f32[1,128], index: 8, kind: input, shape index: {}]   ;;  %s2440_s9 = inlined_call_operand.hbm [shape: f32[64,128], index: 9, kind: output, shape index: {}]  }
   0x1   :  { %2446 = sst [smem:[#allocation23_spill]] %s2433_s2 }
   0x2   :  { %14 = vsyncpa [#allocation4], 0 }
   0x3   :  { %15 = vsyncpa [#allocation7], 0 }
   0x4   :  { %16 = vsyncpa [#allocation10], 0 }
   0x5   :  { %17 = vsyncpa [#allocation5], 0 }
   0x6   :  { %19 = vsyncpa [#allocation5 + $0x1], 0  ;;  %s2131_s30 = smov 0   ;;  %s2133_s10 = smov 0  }
   0x7   :  { %s2135_s11 = smov 0   ;;  %s2137_s12 = smov 0  }
   0x8   :  { %s2139_s13 = smov 0   ;;  %s2141_s14 = smov 0  }
   0x9   :  { %s2143_s15 = smov 0   ;;  %s2145_s16 = smov 0  }
   0xa LB: > { %2447 = sst [smem:[#allocation17_spill]] %s2047_s11  ;;  %s1392_s17 = sadd.s32 4294967295, %s2067_s16   ;;  %s2067_s16 = sphi %s2145_s16, %s25_s16   ;;  %s2063_s15 = sphi %s2143_s15, %s2466_s15   ;;  %s2059_s14 = sphi %s2141_s14, %s2465_s14   ;;  %s2055_s13 = sphi %s2139_s13, %s2464_s13   ;;  %s2051_s12 = sphi %s2137_s12, %s2463_s12   ;;  %s2047_s11 = sphi %s2135_s11, %s2462_s11   ;;  %s2043_s10 = sphi %s2133_s10, %s2468_s10   ;;  %s2039_s30 = sphi %s2131_s30, %s2467_s30  }
   0xb   : > { %2448 = sst [smem:[#allocation18_spill]] %s2059_s14  ;;  %s1393_s18 = sadd.s32 4294967294, %s2067_s16  }
   0xc   : > { %2449 = sst [smem:[#allocation19_spill]] %s2063_s15  ;;  %s34_s19 = sadd.s32 1, %s2059_s14 }
   0xd   : > { %s37_s20 = sadd.s32 1, %s2063_s15  ;;  %p35_p0 = scmp.ge.s32.totalorder %s34_s19, 2 }
   0xe   : > { %s235_s21 = smul.u32 %s2059_s14, %s2063_s15  ;;  %s240_s22 = sadd.s32 1, %s2047_s11 }
   0xf   : > { %p250_p1 = scmp.ne.s32.totalorder %s2047_s11, %s2043_s10  ;;  %s2470_s19 = smov (%p35_p0, %s34_s19), 0 }
  0x10   : > { %2450 = sst [smem:[#allocation20_spill]] %s2470_s19  ;;  %s2472_s20 = smov (!%p35_p0, %s37_s20), %s2063_s15 }
  0x11   : > { %p251_p2 = scmp.eq.s32.totalorder %s1392_s17, 3  ;;  %p256_p3 = scmp.ne.s32.totalorder %s2043_s10, %s2039_s30 }
  0x12   : > { %p39_p4 = scmp.ge.s32.totalorder %s2472_s20, 2  ;;  %p257_p5 = scmp.eq.s32.totalorder %s1393_s18, 3 }
  0x13   : > { %p2185_p6 = por %p251_p2, %p250_p1  ;;  %p1394_p7 = scmp.ge.s32.totalorder %s2067_s16, 1 }
  0x14   : > { %s2474_s20 = smov (%p39_p4, %s2472_s20), 0  ;;  %p2192_p8 = por %p257_p5, %p256_p3 }
  0x15   : > { %2452 = sst [smem:[#allocation21_spill]] %s2474_s20  ;;  %p264_p9 = scmp.lt.s32.totalorder %s2067_s16, 5 }
  0x16   : > { %s2453_s24 = scalar_select %p2192_p8, 1, 0 }
  0x17   : > { %s236_s25 = smul.u32 %s2474_s20, %s2470_s19  ;;  %p2199_p10 = pnand %p1394_p7, %p264_p9 }
  0x18   : > { %p2203_p11 = scmp.eq.s32.totalorder %s1392_s17, 0  ;;  %s2069_s20 = smov [#allocation6]  }
  0x19   : > { %s237_s28 = ssub.s32 %s235_s21, %s236_s25  ;;  %p1675_p13 = pneg %p2199_p10 }
  0x1a   : > { %p238_p12 = scmp.eq.s32.totalorder %s237_s28, 0  ;;  %s289_s19 = sshll.u32 %s2069_s20, 4  ;;  %s290_s19 = int_to_ptr.vmem [resolvable:$true] %s289_s19 }
  0x1b   : > { %p2214_p0 = pnand %p2203_p11, %p1675_p13  ;;  %s2070_s17 = smov [#allocation9]  }
  0x1c   : > { %s2210_s29 = scalar_select %p238_p12, %s2047_s11, %s240_s22  }
  0x1d   : > { %s321_s15 = sshll.u32 %s2070_s17, 4  ;;  %p2220_p1 = pneg %p2214_p0  ;;  %s322_s15 = int_to_ptr.vmem [resolvable:$true] %s321_s15 }
  0x1e   : > { %2456 = sst [smem:[#allocation22_spill]] %s2210_s29  ;;  %s1844_s21 = scalar_lea.vmem %s290_s19, 512 }
  0x1f   : > { %p1845_p2 = scmp.ne.s32.totalorder %s290_s19, %s1844_s21  ;;  %p1852_p5 = scmp.lt.s32.totalorder %s290_s19, %s290_s19 }
  0x20   : > { %p1853_p7 = scmp.lt.s32.totalorder %s1844_s21, %s1844_s21 }
  0x21   : > { %p1847_p3 = pnand %p1845_p2, %p2220_p1 }
  0x22   : > { %p1854_p9 = por %p1853_p7, %p1852_p5 }
  0x23   : > { %p1848_p4 = pneg %p1847_p3 }
  0x25   : > { %p1855_p12 = pnand %p1854_p9, %p1848_p4 }
  0x27   : > { %1858 = shalt.err (!%p1855_p12)
}
  0x28   : > { %s2071_s20 = smov 64   ;;  %s2072_s22 = smov 4  }
  0x29   : > { %s2459_s2 = sld [smem:[#allocation23_spill]]  ;;  %s1870_s17 = scalar_lea.vmem %s322_s15, 1024 }
  0x2a   : > { %p1871_p13 = scmp.ne.s32.totalorder %s322_s15, %s1870_s17  ;;  %p1878_p4 = scmp.lt.s32.totalorder %s322_s15, %s322_s15 }
  0x2b   : > { %p1879_p5 = scmp.lt.s32.totalorder %s1870_s17, %s1870_s17 }
  0x2c   : > { %p1873_p2 = pnand %p1871_p13, %p2220_p1 }
  0x2d   : > { %p1880_p7 = por %p1879_p5, %p1878_p4 }
  0x2e   : > { %p1874_p3 = pneg %p1873_p2 }
  0x2f   : > { %1681 = dma.hbm_to_vmem [thread:$0]  (!%p2214_p0), %s2459_s2, 512, %s290_s19, [#allocation7], %s2071_s20, %s2071_s20, %s2072_s22  }
  0x30   : > { %p1881_p9 = pnand %p1880_p7, %p1874_p3 }
  0x32   : > { %1884 = shalt.err (!%p1881_p9)
}
  0x33   : > { %1687 = dma.hbm_to_vmem [thread:$0]  (!%p2214_p0), %s2437_s6, 1024, %s322_s15, [#allocation10], %s2071_s20, %s2071_s20, %s2072_s22  }
  0x34   : > { %s2073_s19 = smov [#allocation3]   ;;  %s2074_s28 = smov [#allocation8]  }
  0x35   : > { %s276_s25 = sshll.u32 %s2073_s19, 4  ;;  %s305_s2 = sshll.u32 %s2074_s28, 4  ;;  %s277_s25 = int_to_ptr.vmem [resolvable:$true] %s276_s25  ;;  %s306_s2 = int_to_ptr.vmem [resolvable:$true] %s305_s2 }
  0x36   : > { %s1896_s11 = scalar_lea.vmem %s277_s25, 512  ;;  %p1904_p3 = scmp.lt.s32.totalorder %s277_s25, %s277_s25 }
  0x37   : > { %p1897_p12 = scmp.ne.s32.totalorder %s277_s25, %s1896_s11  ;;  %p1905_p4 = scmp.lt.s32.totalorder %s1896_s11, %s1896_s11 }
  0x39   : > { %p1899_p13 = pnand %p1897_p12, %p2220_p1  ;;  %p1906_p5 = por %p1905_p4, %p1904_p3 }
  0x3b   : > { %p1900_p2 = pneg %p1899_p13 }
  0x3d   : > { %p1907_p7 = pnand %p1906_p5, %p1900_p2 }
  0x3f   : > { %1910 = shalt.err (!%p1907_p7)
}
  0x40   : > { %1678 = dma.hbm_to_vmem [thread:$0]  (!%p2214_p0), %s2431_s0, 512, %s277_s25, [#allocation4], %s2071_s20, %s2071_s20, %s2072_s22  }
  0x41   : > { %s1922_s17 = scalar_lea.vmem %s306_s2, 1024  ;;  %p1930_p8 = scmp.lt.s32.totalorder %s306_s2, %s306_s2 }
  0x42   : > { %p1923_p9 = scmp.ne.s32.totalorder %s306_s2, %s1922_s17  ;;  %p1931_p3 = scmp.lt.s32.totalorder %s1922_s17, %s1922_s17 }
  0x44   : > { %p1925_p12 = pnand %p1923_p9, %p2220_p1  ;;  %p1932_p2 = por %p1931_p3, %p1930_p8 }
  0x46   : > { %p1926_p13 = pneg %p1925_p12 }
  0x48   : > { %p1933_p4 = pnand %p1932_p2, %p1926_p13 }
  0x4a   : > { %1936 = shalt.err (!%p1933_p4)
}
  0x4b   : > { %1684 = dma.hbm_to_vmem [thread:$0]  (!%p2214_p0), %s2435_s4, 1024, %s306_s2, [#allocation7], %s2071_s20, %s2071_s20, %s2072_s22  }
  0x4c   : > { %s2075_s19 = smov [#allocation11]  }
  0x4d   : > { %s334_s25 = sshll.u32 %s2075_s19, 4  ;;  %s335_s25 = int_to_ptr.vmem [resolvable:$true] %s334_s25 }
  0x4e   : > { %s1948_s28 = scalar_lea.vmem %s335_s25, 1024  ;;  %p1956_p9 = scmp.lt.s32.totalorder %s335_s25, %s335_s25 }
  0x4f   : > { %p1949_p5 = scmp.ne.s32.totalorder %s335_s25, %s1948_s28  ;;  %p1957_p12 = scmp.lt.s32.totalorder %s1948_s28, %s1948_s28 }
  0x51   : > { %p1951_p7 = pnand %p1949_p5, %p2220_p1  ;;  %p1958_p13 = por %p1957_p12, %p1956_p9 }
  0x53   : > { %p1952_p8 = pneg %p1951_p7 }
  0x55   : > { %p1959_p3 = pnand %p1958_p13, %p1952_p8 }
  0x57   : > { %1962 = shalt.err (!%p1959_p3)
}
  0x58   : > { %1690 = dma.hbm_to_vmem [thread:$0]  (!%p2214_p0), %s2438_s7, 1024, %s335_s25, [#allocation10], %s2071_s20, %s2071_s20, %s2072_s22  }
  0x59   : > { %362 = sbr.rel (%p2199_p10) target bundleno = 995 (0x3e3), region = 56 }
  0x5e   : > { %2022 = dma.done.wait (%p2203_p11), [#allocation4], 512  }
  0x5f   : > { %2024 = vsyncadd (%p2203_p11), [#allocation4], 4294966784 }
  0x60   : > { %2026 = dma.done.wait (%p2203_p11), [#allocation7], 1536  }
  0x61   : > { %2028 = vsyncadd (%p2203_p11), [#allocation7], 4294965760 }
  0x62   : > { %2030 = dma.done.wait (%p2203_p11), [#allocation10], 2048  }
  0x63   : > { %2032 = vsyncadd (%p2203_p11), [#allocation10], 4294965248  ;;  %s411_s14 = sand.u32 1, %s2043_s10   ;;  %s1408_s26 = sshll.u32 %s2051_s12, 2 }
  0x64   : > { %s1407_s18 = sshll.u32 %s411_s14, 5  ;;  %p415_p10 = scmp.lt.s32.totalorder %s1408_s26, 7 }
  0x65   : > { %s1410_s20 = sshll.u32 %s2051_s12, 5  ;;  %s2298_s21 = scalar_lea.vmem [#allocation12], %s1407_s18 }
  0x66   : > { %s2476_s26 = smov (!%p415_p10, %s1408_s26), 7  ;;  %p1411_p11 = scmp.ne.s32.totalorder %s2055_s13, 0 }
  0x67   : > { %s1409_s22 = sshll.u32 %s2476_s26, 3  ;;  %s428_s27 = sshra.s32 (!%p1411_p11), %s1410_s20, 3 }
  0x68   : > { %s2296_s11 = scalar_lea.vmem %s2432_s1, %s1409_s22  ;;  %427 = sbr.rel (%p1411_p11) target bundleno = 538 (0x21a), region = 80 }
  0x69   : > { %s2303_s19 = sshll.u32 (!%p1411_p11), %s428_s27, 2 }
  0x6a   : > { %s437_s25 = scalar_lea.vmem (!%p1411_p11), [#allocation3], %s2303_s19  ;;  %s431_s29 = scalar_lea.vmem (!%p1411_p11), [#allocation6], %s2303_s19 }
  0x6d   : > { %v1783_v0 = vld [vmem:[#allocation6 + $0x18] sm:$0xff]   ;;  %v1784_v1 = vld [vmem:[#allocation6 + $0x10] sm:$0xff]   ;;  %v1785_v2 = vld [vmem:[#allocation6 + $0x8] sm:$0xff]   ;;  %vm484_vm0 = vcmask 523264   ;;  %v2076_v4 = vmov 0  }
  0x6e   : > { %1549 = vmatprep.subr.bf16.mxu0 %v1783_v0  ;;  %v1787_v3 = vld [vmem:[%s437_s25] sm:$0xff]   ;;  %1781 = vset.pattern.permute.xlu0 %v2076_v4  ;;  %v542_v6 = vld [vmem:[%s2296_s11 + $0x10] sm:$0xff]  ;;  %v541_v8 = vld [vmem:[%s2296_s11 + $0x8] sm:$0xff] }
  0x6f   : > { %1550 = vmatpush3.bf16.msra.mxu0 %v1783_v0  ;;  %1782 = vset.pattern.permute.xlu1 %v2076_v4  ;;  %v540_v5 = vld [vmem:[%s2296_s11] sm:$0xff]  ;;  %v543_v9 = vld [vmem:[%s2296_s11 + $0x18] sm:$0xff]  ;;  %v1793_v12 = vld [vmem:[#allocation8 + $0x30] sm:$0xff]  }
  0x70   : > { %1551 = vmatprep.subr.bf16.mxu0 %v1784_v1  ;;  %1557 = vmatprep.mubr.msk.bf16.mxu0 %vm484_vm0, %v1787_v3  ;;  %v1786_v7 = vld [vmem:[#allocation6] sm:$0xff]   ;;  %v1791_v10 = vld [vmem:[#allocation8 + $0x38] sm:$0xff]   ;;  %v1788_v13 = vld [vmem:[%s437_s25 + $0x8] sm:$0xff]   ;;  %s840_s25 = scalar_lea.vmem [#allocation2], %s2303_s19 }
  0x71   : > { %546 = vperm.xlu0 %1781, %v540_v5   ;;  %556 = vperm.xlu1 %1782, %v542_v6   ;;  %v1789_v11 = vld [vmem:[%s2434_s3 + $0x38] sm:$0xff]   ;;  %v1795_v14 = vld [vmem:[#allocation8 + $0x28] sm:$0xff]   ;;  %v1790_v15 = vld [vmem:[%s2434_s3 + $0x30] sm:$0xff]  }
  0x72   : > { %1561 = vmatprep.subr.bf16.mxu1 %v1791_v10  ;;  %v1792_v16 = vld [vmem:[%s2434_s3 + $0x28] sm:$0xff]   ;;  %v1797_v17 = vld [vmem:[#allocation8 + $0x20] sm:$0xff]   ;;  %v1799_v18 = vld [vmem:[#allocation8 + $0x18] sm:$0xff]  }
  0x73   : > { %1552 = vmatpush3.bf16.msra.mxu0 %v1784_v1  ;;  %1562 = vmatpush3.bf16.msra.mxu1 %v1791_v10  ;;  %v1794_v19 = vld [vmem:[%s2434_s3 + $0x20] sm:$0xff]   ;;  %v1796_v20 = vld [vmem:[%s2434_s3 + $0x18] sm:$0xff]   ;;  %v1798_v21 = vld [vmem:[%s2434_s3 + $0x10] sm:$0xff]  }
  0x74   : > { %1553 = vmatprep.subr.bf16.mxu0 %v1785_v2  ;;  %1563 = vmatprep.subr.bf16.mxu1 %v1793_v12  ;;  %v1800_v22 = vld [vmem:[%s2434_s3 + $0x8] sm:$0xff]   ;;  %v1801_v23 = vld [vmem:[#allocation8 + $0x10] sm:$0xff]   ;;  %v1802_v24 = vld [vmem:[%s2434_s3] sm:$0xff]  }
  0x75   : > { %551 = vperm.xlu0 %1781, %v541_v8   ;;  %561 = vperm.xlu1 %1782, %v543_v9   ;;  %v1803_v25 = vld [vmem:[#allocation8 + $0x8] sm:$0xff]   ;;  %v1804_v26 = vld [vmem:[%s431_s29] sm:$0xff]  }
  0x76   : > { %v1805_v27 = vld [vmem:[%s431_s29 + $0x8] sm:$0xff]   ;;  %v1806_v28 = vld [vmem:[#allocation8] sm:$0xff]  }
  0x77   : > { %1554 = vmatpush3.bf16.msra.mxu0 %v1785_v2  ;;  %1564 = vmatpush3.bf16.msra.mxu1 %v1793_v12  ;;  %v1440_v48 = vld [vmem:[%s2436_s5] ss:$0 sm:$0xff] }
  0x78   : > { %1555 = vmatprep.subr.bf16.mxu0 %v1786_v7  ;;  %1565 = vmatprep.subr.bf16.mxu1 %v1795_v14 }
  0x7b   : > { %1556 = vmatpush3.bf16.msra.mxu0 %v1786_v7  ;;  %1566 = vmatpush3.bf16.msra.mxu1 %v1795_v14 }
  0x7c   : > { %1581 = vmatprep.subr.bf16.mxu0 %v1789_v11  ;;  %1567 = vmatprep.subr.bf16.mxu1 %v1797_v17 }
  0x7e   : > { %1558 = vmatmul.mubr.msk.bf16.vlgmr.msra.gmra.mxu0 %vm484_vm0, %v1788_v13 }
  0x7f   : > { %1582 = vmatpush3.bf16.msra.mxu0 %v1789_v11  ;;  %1568 = vmatpush3.bf16.msra.mxu1 %v1797_v17 }
  0x80   : > { %1583 = vmatprep.subr.bf16.mxu0 %v1790_v15  ;;  %1569 = vmatprep.subr.bf16.mxu1 %v1799_v18 }
  0x81   : > { %1597 = vmatprep.mubr.bf16.mxu0 %v1804_v26 }
  0x83   : > { %1584 = vmatpush3.bf16.msra.mxu0 %v1790_v15  ;;  %1570 = vmatpush3.bf16.msra.mxu1 %v1799_v18 }
  0x84   : > { %1585 = vmatprep.subr.bf16.mxu0 %v1792_v16  ;;  %1571 = vmatprep.subr.bf16.mxu1 %v1801_v23 }
  0x87   : > { %1586 = vmatpush3.bf16.msra.mxu0 %v1792_v16  ;;  %1572 = vmatpush3.bf16.msra.mxu1 %v1801_v23 }
  0x88   : > { %1587 = vmatprep.subr.bf16.mxu0 %v1794_v19  ;;  %1573 = vmatprep.subr.bf16.mxu1 %v1803_v25 }
  0x8b   : > { %1588 = vmatpush3.bf16.msra.mxu0 %v1794_v19  ;;  %1574 = vmatpush3.bf16.msra.mxu1 %v1803_v25 }
  0x8c   : > { %1589 = vmatprep.subr.bf16.mxu0 %v1796_v20  ;;  %1575 = vmatprep.subr.bf16.mxu1 %v1806_v28 }
  0x8f   : > { %1590 = vmatpush3.bf16.msra.mxu0 %v1796_v20  ;;  %1576 = vmatpush3.bf16.msra.mxu1 %v1806_v28 }
  0x90   : > { %1591 = vmatprep.subr.bf16.mxu0 %v1798_v21 }
  0x93   : > { %1592 = vmatpush3.bf16.msra.mxu0 %v1798_v21 }
  0x94   : > { %1593 = vmatprep.subr.bf16.mxu0 %v1800_v22 }
  0x97   : > { %1594 = vmatpush3.bf16.msra.mxu0 %v1800_v22 }
  0x98   : > { %1595 = vmatprep.subr.bf16.mxu0 %v1802_v24 }
  0x9b   : > { %1596 = vmatpush3.bf16.msra.mxu0 %v1802_v24 }
  0x9e   : > { %1598 = vmatmul.mubr.bf16.vlgmr.msra.gmra.mxu0 %v1805_v27 }
  0xec   : > { %v557_v29 = vpop.permute.xlu1 %556  ;;  %v547_v30 = vpop.permute.xlu0 %546 }
  0xf0   : > { %v562_v33 = vpop.permute.xlu1 %561  ;;  %v552_v35 = vpop.permute.xlu0 %551 }
 0x13e   : > { %v1559_v31 = vpop.f32.mrf.mxu0 }
 0x13f   : > { %v566_v40 = vmul.f32 %v1559_v31, %v557_v29 }
 0x140   : > { %v525_v32 = vpop.f32.mrf.mxu0 }
 0x141   : > { %v564_v38 = vmul.f32 %v547_v30, %v525_v32 }
 0x142   : > { %v1560_v34 = vpop.f32.mrf.mxu0 }
 0x143   : > { %v567_v36 = vmul.f32 %v1560_v34, %v562_v33 }
 0x144   : > { %v528_v37 = vpop.f32.mrf.mxu0 }
 0x145   : > { %v565_v39 = vmul.f32 %v552_v35, %v528_v37  ;;  %v569_v42 = vpack.c.bf16 %v567_v36, %v566_v40 }
 0x147   : > { %v568_v41 = vpack.c.bf16 %v565_v39, %v564_v38 }
 0x149   : > { %1577 = vmatprep.mubr.bf16.mxu1 %v568_v41 }
 0x14a   : > { %1578 = vmatmul.mubr.bf16.vlgmr.msra.gmra.mxu1 %v569_v42 }
 0x15e   : > { %v1599_v43 = vpop.f32.mrf.mxu0 }
 0x160   : > { %v793_v44 = vpop.f32.mrf.mxu0 }
 0x162   : > { %v1600_v47 = vpop.f32.mrf.mxu0 }
 0x164   : > { %v796_v54 = vpop.f32.mrf.mxu0 }
 0x20a   : > { %v1579_v45 = vpop.f32.mrf.mxu1 }
 0x20b   : > { %v802_v46 = vadd.f32 %v1599_v43, %v1579_v45 }
 0x20c   : > { %v684_v49 = vpop.f32.mrf.mxu1 }
 0x20d   : > { %v794_v50 = vadd.f32 %v793_v44, %v684_v49  ;;  %v817_v52 = vadd.f32 %v1440_v48, %v802_v46 }
 0x20e   : > { %v1580_v51 = vpop.f32.mrf.mxu1 }
 0x20f   : > { %v805_v53 = vadd.f32 %v1600_v47, %v1580_v51  ;;  %v815_v56 = vadd.f32 %v1440_v48, %v794_v50  ;;  %v821_v59 = vmax.f32 %v817_v52, 0.0 }
 0x210   : > { %v687_v55 = vpop.f32.mrf.mxu1 }
 0x211   : > { %v818_v57 = vadd.f32 %v1440_v48, %v805_v53  ;;  %v797_v58 = vadd.f32 %v796_v54, %v687_v55  ;;  %v819_v62 = vmax.f32 %v815_v56, 0.0 }
 0x213   : > { %v822_v60 = vmax.f32 %v818_v57, 0.0  ;;  %v816_v61 = vadd.f32 %v1440_v48, %v797_v58 }
 0x215   : > { %v1494_v63 = vpack.c.bf16 %v822_v60, %v821_v59  ;;  %v820_v0 = vmax.f32 %v816_v61, 0.0 }
 0x217   : > { %1496 = vst [vmem:[%s840_s25 + $0x8] sm:$0xff] %v1494_v63   ;;  %v1489_v1 = vpack.c.bf16 %v820_v0, %v819_v62 }
 0x219   : > { %1490 = vst [vmem:[%s840_s25] sm:$0xff] %v1489_v1  }
 0x21a PF: > { %p1446_p0 = scmp.ne.s32.totalorder %s2055_s13, 1 }
 0x21b   : > { %s2344_s28 = sshra.s32 (!%p1446_p0), %s1410_s20, 3 }
 0x21c   : > { %848 = sbr.rel (%p1446_p0) target bundleno = 970 (0x3ca), region = 84  ;;  %s1447_s15 = sshll.u32 (!%p1446_p0), %s2344_s28, 2 }
 0x21d   : > { %s858_s19 = scalar_lea.vmem (!%p1446_p0), [#allocation3], %s1447_s15  ;;  %s2357_s20 = scalar_lea.vmem (!%p1446_p0), [#allocation2], %s1447_s15 }
 0x221   : > { %v1809_v2 = vld [vmem:[#allocation2 + $0x18] sm:$0xff]   ;;  %v1810_v3 = vld [vmem:[#allocation2 + $0x10] sm:$0xff]   ;;  %v1811_v4 = vld [vmem:[#allocation2 + $0x8] sm:$0xff]   ;;  %vm905_vm1 = vcmask 523264   ;;  %v2077_v6 = vmov 0  }
 0x222   : > { %1601 = vmatprep.subr.bf16.mxu0 %v1809_v2  ;;  %v1813_v5 = vld [vmem:[%s858_s19] sm:$0xff]   ;;  %1807 = vset.pattern.permute.xlu0 %v2077_v6  ;;  %v963_v8 = vld [vmem:[%s2296_s11 + $0x10] sm:$0xff]  ;;  %v962_v10 = vld [vmem:[%s2296_s11 + $0x8] sm:$0xff] }
 0x223   : > { %1602 = vmatpush3.bf16.msra.mxu0 %v1809_v2  ;;  %1609 = vmatprep.mubr.msk.bf16.mxu0 %vm905_vm1, %v1813_v5  ;;  %v961_v7 = vld [vmem:[%s2296_s11] sm:$0xff]  ;;  %v964_v11 = vld [vmem:[%s2296_s11 + $0x18] sm:$0xff]  ;;  %v1819_v14 = vld [vmem:[#allocation11 + $0x30] sm:$0xff]  }
 0x224   : > { %1603 = vmatprep.subr.bf16.mxu0 %v1810_v3  ;;  %v1812_v9 = vld [vmem:[#allocation2] sm:$0xff]   ;;  %1808 = vset.pattern.permute.xlu1 %v2077_v6  ;;  %v1817_v12 = vld [vmem:[#allocation11 + $0x38] sm:$0xff]   ;;  %v1814_v15 = vld [vmem:[%s858_s19 + $0x8] sm:$0xff]  }
 0x225   : > { %967 = vperm.xlu0 %1807, %v961_v7   ;;  %977 = vperm.xlu1 %1808, %v963_v8   ;;  %v1815_v13 = vld [vmem:[#allocation9 + $0x38] sm:$0xff]   ;;  %v1821_v16 = vld [vmem:[#allocation11 + $0x28] sm:$0xff]   ;;  %v1816_v17 = vld [vmem:[#allocation9 + $0x30] sm:$0xff]  }
 0x226   : > { %1613 = vmatprep.subr.bf16.mxu1 %v1817_v12  ;;  %v1818_v18 = vld [vmem:[#allocation9 + $0x28] sm:$0xff]   ;;  %v1823_v19 = vld [vmem:[#allocation11 + $0x20] sm:$0xff]   ;;  %v1825_v20 = vld [vmem:[#allocation11 + $0x18] sm:$0xff]  }
 0x227   : > { %1604 = vmatpush3.bf16.msra.mxu0 %v1810_v3  ;;  %1614 = vmatpush3.bf16.msra.mxu1 %v1817_v12  ;;  %v1820_v21 = vld [vmem:[#allocation9 + $0x20] sm:$0xff]   ;;  %v1822_v22 = vld [vmem:[#allocation9 + $0x18] sm:$0xff]   ;;  %v1824_v23 = vld [vmem:[#allocation9 + $0x10] sm:$0xff]  }
 0x228   : > { %1605 = vmatprep.subr.bf16.mxu0 %v1811_v4  ;;  %1615 = vmatprep.subr.bf16.mxu1 %v1819_v14  ;;  %v1826_v24 = vld [vmem:[#allocation9 + $0x8] sm:$0xff]   ;;  %v1827_v25 = vld [vmem:[#allocation11 + $0x10] sm:$0xff]   ;;  %v1828_v26 = vld [vmem:[#allocation9] sm:$0xff]  }
 0x229   : > { %972 = vperm.xlu0 %1807, %v962_v10   ;;  %982 = vperm.xlu1 %1808, %v964_v11   ;;  %v1829_v27 = vld [vmem:[#allocation11 + $0x8] sm:$0xff]   ;;  %v1830_v28 = vld [vmem:[%s2357_s20] sm:$0xff]  }
 0x22a   : > { %v1831_v29 = vld [vmem:[%s2357_s20 + $0x8] sm:$0xff]   ;;  %v1832_v30 = vld [vmem:[#allocation11] sm:$0xff]  }
 0x22b   : > { %1606 = vmatpush3.bf16.msra.mxu0 %v1811_v4  ;;  %1616 = vmatpush3.bf16.msra.mxu1 %v1819_v14  ;;  %v1475_v48 = vld [vmem:[%s2439_s8] ss:$0 sm:$0xff] }
 0x22c   : > { %1607 = vmatprep.subr.bf16.mxu0 %v1812_v9  ;;  %1617 = vmatprep.subr.bf16.mxu1 %v1821_v16 }
 0x22f   : > { %1608 = vmatpush3.bf16.msra.mxu0 %v1812_v9  ;;  %1618 = vmatpush3.bf16.msra.mxu1 %v1821_v16 }
 0x230   : > { %1633 = vmatprep.subr.bf16.mxu0 %v1815_v13  ;;  %1619 = vmatprep.subr.bf16.mxu1 %v1823_v19 }
 0x232   : > { %1610 = vmatmul.mubr.msk.bf16.vlgmr.msra.gmra.mxu0 %vm905_vm1, %v1814_v15 }
 0x233   : > { %1634 = vmatpush3.bf16.msra.mxu0 %v1815_v13  ;;  %1620 = vmatpush3.bf16.msra.mxu1 %v1823_v19 }
 0x234   : > { %1635 = vmatprep.subr.bf16.mxu0 %v1816_v17  ;;  %1621 = vmatprep.subr.bf16.mxu1 %v1825_v20 }
 0x235   : > { %1649 = vmatprep.mubr.bf16.mxu0 %v1830_v28 }
 0x237   : > { %1636 = vmatpush3.bf16.msra.mxu0 %v1816_v17  ;;  %1622 = vmatpush3.bf16.msra.mxu1 %v1825_v20 }
 0x238   : > { %1637 = vmatprep.subr.bf16.mxu0 %v1818_v18  ;;  %1623 = vmatprep.subr.bf16.mxu1 %v1827_v25 }
 0x23b   : > { %1638 = vmatpush3.bf16.msra.mxu0 %v1818_v18  ;;  %1624 = vmatpush3.bf16.msra.mxu1 %v1827_v25 }
 0x23c   : > { %1639 = vmatprep.subr.bf16.mxu0 %v1820_v21  ;;  %1625 = vmatprep.subr.bf16.mxu1 %v1829_v27 }
 0x23f   : > { %1640 = vmatpush3.bf16.msra.mxu0 %v1820_v21  ;;  %1626 = vmatpush3.bf16.msra.mxu1 %v1829_v27 }
 0x240   : > { %1641 = vmatprep.subr.bf16.mxu0 %v1822_v22  ;;  %1627 = vmatprep.subr.bf16.mxu1 %v1832_v30 }
 0x243   : > { %1642 = vmatpush3.bf16.msra.mxu0 %v1822_v22  ;;  %1628 = vmatpush3.bf16.msra.mxu1 %v1832_v30 }
 0x244   : > { %1643 = vmatprep.subr.bf16.mxu0 %v1824_v23 }
 0x247   : > { %1644 = vmatpush3.bf16.msra.mxu0 %v1824_v23 }
 0x248   : > { %1645 = vmatprep.subr.bf16.mxu0 %v1826_v24 }
 0x24b   : > { %1646 = vmatpush3.bf16.msra.mxu0 %v1826_v24 }
 0x24c   : > { %1647 = vmatprep.subr.bf16.mxu0 %v1828_v26 }
 0x24f   : > { %1648 = vmatpush3.bf16.msra.mxu0 %v1828_v26 }
 0x252   : > { %1650 = vmatmul.mubr.bf16.vlgmr.msra.gmra.mxu0 %v1831_v29 }
 0x2a0   : > { %v978_v31 = vpop.permute.xlu1 %977  ;;  %v968_v32 = vpop.permute.xlu0 %967 }
 0x2a4   : > { %v983_v35 = vpop.permute.xlu1 %982  ;;  %v973_v37 = vpop.permute.xlu0 %972 }
 0x2f2   : > { %v1611_v33 = vpop.f32.mrf.mxu0 }
 0x2f3   : > { %v987_v42 = vmul.f32 %v1611_v33, %v978_v31 }
 0x2f4   : > { %v946_v34 = vpop.f32.mrf.mxu0 }
 0x2f5   : > { %v985_v40 = vmul.f32 %v968_v32, %v946_v34 }
 0x2f6   : > { %v1612_v36 = vpop.f32.mrf.mxu0 }
 0x2f7   : > { %v988_v38 = vmul.f32 %v1612_v36, %v983_v35 }
 0x2f8   : > { %v949_v39 = vpop.f32.mrf.mxu0 }
 0x2f9   : > { %v986_v41 = vmul.f32 %v973_v37, %v949_v39  ;;  %v990_v44 = vpack.c.bf16 %v988_v38, %v987_v42 }
 0x2fb   : > { %v989_v43 = vpack.c.bf16 %v986_v41, %v985_v40 }
 0x2fd   : > { %1629 = vmatprep.mubr.bf16.mxu1 %v989_v43 }
 0x2fe   : > { %1630 = vmatmul.mubr.bf16.vlgmr.msra.gmra.mxu1 %v990_v44 }
 0x312   : > { %v1651_v45 = vpop.f32.mrf.mxu0 }
 0x314   : > { %v1214_v46 = vpop.f32.mrf.mxu0 }
 0x316   : > { %v1652_v50 = vpop.f32.mrf.mxu0 }
 0x318   : > { %v1217_v57 = vpop.f32.mrf.mxu0 }
 0x3be   : > { %v1631_v47 = vpop.f32.mrf.mxu1 }
 0x3bf   : > { %v1223_v49 = vadd.f32 %v1651_v45, %v1631_v47 }
 0x3c0   : > { %v1105_v51 = vpop.f32.mrf.mxu1 }
 0x3c1   : > { %v1238_v52 = vadd.f32 %v1475_v48, %v1223_v49  ;;  %v1215_v53 = vadd.f32 %v1214_v46, %v1105_v51 }
 0x3c2   : > { %v1632_v54 = vpop.f32.mrf.mxu1 }
 0x3c3   : > { %1242 = vst [vmem:[%s2298_s21 + $0x10] sm:$0xff] %v1238_v52  ;;  %v1236_v55 = vadd.f32 %v1475_v48, %v1215_v53  ;;  %v1226_v56 = vadd.f32 %v1652_v50, %v1632_v54 }
 0x3c4   : > { %v1108_v58 = vpop.f32.mrf.mxu1 }
 0x3c5   : > { %1240 = vst [vmem:[%s2298_s21] sm:$0xff] %v1236_v55  ;;  %v1239_v59 = vadd.f32 %v1475_v48, %v1226_v56  ;;  %v1218_v60 = vadd.f32 %v1217_v57, %v1108_v58 }
 0x3c7   : > { %1243 = vst [vmem:[%s2298_s21 + $0x18] sm:$0xff] %v1239_v59  ;;  %v1237_v61 = vadd.f32 %v1475_v48, %v1218_v60 }
 0x3c9   : > { %1241 = vst [vmem:[%s2298_s21 + $0x8] sm:$0xff] %v1237_v61 }
 0x3ca PF: > { %s1252_s26 = smul.u32 %s2051_s12, %s2055_s13  ;;  %s1259_s18 = sshll.u32 %s2298_s21, 4  ;;  %s2371_s18 = int_to_ptr.vmem [resolvable:$true] %s1259_s18 }
 0x3cb   : > { %s2380_s25 = scalar_lea.sflag [#allocation5], %s411_s14  ;;  %s1963_s28 = scalar_lea.vmem %s2371_s18, 512 }
 0x3cc   : > { %s1485_s22 = sshll.u32 %s1252_s26, 9  ;;  %p1964_p1 = scmp.ne.s32.totalorder %s2371_s18, %s1963_s28 }
 0x3cd   : > { %s2376_s27 = scalar_lea.hbm %s2440_s9, %s1485_s22  ;;  %s2078_s12 = smov [#allocation12]  }
 0x3ce   : > { %p1965_p2 = pnand %p1964_p1, %p2185_p6  ;;  %s1967_s13 = sshll.u32 %s2078_s12, 4  ;;  %s1968_s13 = int_to_ptr.vmem [resolvable:$false] %s1967_s13 }
 0x3cf   : > { %s1969_s21 = scalar_lea.vmem %s1968_s13, 1024  ;;  %p1970_p5 = scmp.lt.s32.totalorder %s2371_s18, %s1968_s13 }
 0x3d0   : > { %p1966_p4 = pneg %p1965_p2  ;;  %p1971_p7 = scmp.lt.s32.totalorder %s1969_s21, %s1963_s28 }
 0x3d2   : > { %p1972_p8 = por %p1971_p7, %p1970_p5 }
 0x3d4   : > { %p1973_p9 = pnand %p1972_p8, %p1966_p4 }
 0x3d6   : > { %1976 = shalt.err (!%p1973_p9)
}
 0x3d7   : > { %s1977_s14 = scalar_lea.hbm %s2376_s27, 512  ;;  %s1981_s20 = scalar_lea.hbm %s2440_s9, 1024 }
 0x3d8   : > { %p1978_p12 = scmp.ne.s32.totalorder %s2376_s27, %s1977_s14  ;;  %p1982_p10 = scmp.lt.s32.totalorder %s2376_s27, %s2440_s9 }
 0x3d9   : > { %p1983_p11 = scmp.lt.s32.totalorder %s1981_s20, %s1977_s14 }
 0x3da   : > { %p1979_p13 = pnand %p1978_p12, %p2185_p6 }
 0x3db   : > { %p1984_p0 = por %p1983_p11, %p1982_p10 }
 0x3dc   : > { %p1980_p3 = pneg %p1979_p13 }
 0x3de   : > { %p1985_p1 = pnand %p1984_p0, %p1980_p3 }
 0x3e0   : > { %1988 = shalt.err (!%p1985_p1)
}
 0x3e1   : > { %s2079_s26 = smov 128   ;;  %s2080_s22 = smov 8  }
 0x3e2   : > { %1673 = dma.vmem_to_hbm [thread:$0]  (%p2185_p6), %s2371_s18, 512, %s2376_s27, %s2380_s25, %s2079_s26, %s2079_s26, %s2080_s22  }
 0x3e3 PF: > { %p1705_p2 = scmp.ge.s32.totalorder %s2067_s16, 2  ;;  %s1274_s29 = sand.u32 1, %s2039_s30  }
 0x3e4   : > { %p2460_p4 = scmp.ne.s32.totalorder %s2453_s24, 0  ;;  %s1275_s17 = scalar_lea.sflag [#allocation5], %s1274_s29 }
 0x3e6   : > { %p1692_p5 = pnand %p1705_p2, %p2460_p4 }
 0x3e8   : > { %p1693_p7 = pneg %p1692_p5 }
 0x3ea   : > { %2034 = dma.done.wait (%p1693_p7), %s1275_s17, 512  }
 0x3eb   : > { %2036 = vsyncadd (%p1693_p7), %s1275_s17, 4294966784  ;;  %s25_s16 = sadd.s32 1, %s2067_s16   ;;  %s2461_s28 = sld [smem:[#allocation17_spill]] }
 0x3ec   : > { %p22_p8 = scmp.ge.s32.totalorder %s25_s16, 6   ;;  %s2462_s11 = sld [smem:[#allocation22_spill]] }
 0x3ed   : > { %s2463_s12 = sld [smem:[#allocation18_spill]]  ;;  %s2467_s30 = smov %s2043_s10 }
 0x3ee   : > { %s2464_s13 = sld [smem:[#allocation19_spill]]  ;;  %24 = sbr.rel (!%p22_p8) target bundleno = 10 (0xa), region = 125 }
 0x3ef   : > { %s2465_s14 = sld [smem:[#allocation20_spill]] }
 0x3f0   : > { %s2466_s15 = sld [smem:[#allocation21_spill]] }
 0x3f1   : > { %s2468_s10 = smov %s2461_s28 }
 0x3f3   :  { %1280 = vsyncpa [#allocation4], 1 }
 0x3f4   :  { %1282 = vsyncpa [#allocation4 + $0x1], 1 }
 0x3f5   :  { %1283 = vsyncpa [#allocation7], 1 }
 0x3f6   :  { %1284 = vsyncpa [#allocation10], 1 }
 0x3f7   :  { %1285 = vsyncpa [#allocation5], 1 }
 0x3f8   :  { %1287 = vsyncpa [#allocation5 + $0x1], 1 }

</bundles_post_ra>
